<compile_context>
chip_gen: v7x
topology: tpu7x:2x2x1
jax: 0.10.0
libtpu: 0.0.40
codegen_flags: <defaults>
</compile_context>

<pallas_src>
import functools
import math

import jax
import jax.numpy as jnp
import numpy as np
from jax import lax
from jax.experimental import pallas as pl
from jax.experimental.pallas import tpu as pltpu


# ----------------------------- Pallas kernel -----------------------------

def _interp_kernel(x_ref, awt_ref, ah_ref, o_ref, *, precision):
    # x_ref:   (cb, Hin, Win)   input channel-block, native dtype (no up-cast)
    # awt_ref: (Win, Wout)      A_w^T  (W-axis interpolation matrix, transposed)
    # ah_ref:  (th, Hin)        A_h row-block (H-axis interpolation matrix)
    # o_ref:   (cb, th, Wout)
    cb = x_ref.shape[0]
    awt = awt_ref[...]
    ah = ah_ref[...]

    # Per-channel fused two-stage matmul: bounds the live f32 intermediate to a
    # single (Hin, Wout) slab and avoids replicating A_h across the block.
    @pl.loop(0, cb)
    def _(c):
        # W axis: lane-contiguous MXU matmul, f32 accumulation.
        t = jnp.dot(x_ref[c], awt,
                    preferred_element_type=jnp.float32,
                    precision=precision)                     # (Hin, Wout)
        # H axis.
        o_ref[c] = jnp.dot(ah, t,
                           preferred_element_type=jnp.float32,
                           precision=precision).astype(o_ref.dtype)  # (th, Wout)


# --------------------- trace-time interpolation matrices -------------------

def _src_index_weights(in_size, out_size, mode, align_corners):
    """PyTorch F.interpolate source indices / weights for one spatial axis."""
    o = np.arange(out_size, dtype=np.float64)
    if mode == 'nearest':
        idx = np.floor(o * (in_size / out_size)).astype(np.int64)
        idx = np.clip(idx, 0, in_size - 1)
        return (idx,), (np.ones(out_size, np.float64),)
    # (bi)linear
    if align_corners:
        src = o * ((in_size - 1) / (out_size - 1)) if out_size > 1 else np.zeros_like(o)
    else:
        src = (o + 0.5) * (in_size / out_size) - 0.5
        src = np.maximum(src, 0.0)
    i0 = np.clip(np.floor(src).astype(np.int64), 0, in_size - 1)
    i1 = np.minimum(i0 + 1, in_size - 1)
    w1 = src - i0
    w0 = 1.0 - w1
    return (i0, i1), (w0, w1)


def _interp_matrix(in_size, out_size, mode, align_corners):
    idxs, wts = _src_index_weights(in_size, out_size, mode, align_corners)
    m = np.zeros((out_size, in_size), np.float64)
    rows = np.arange(out_size)
    for idx, w in zip(idxs, wts):
        np.add.at(m, (rows, idx), w)
    return m.astype(np.float32)


def _pair(v):
    if v is None:
        return (None, None)
    if isinstance(v, (tuple, list)):
        return tuple(v)
    return (v, v)


def _output_size(in_hw, size, scale_factor):
    if size is not None:
        sh, sw = _pair(size)
        return int(sh), int(sw)
    if scale_factor is None:
        raise ValueError("either size or scale_factor must be given")
    fh, fw = _pair(scale_factor)
    return int(math.floor(in_hw[0] * fh)), int(math.floor(in_hw[1] * fw))


# ----------------------------- block sizing -----------------------------

def _vmem_budget():
    """(block budget, explicit scoped-VMEM limit), derived from the chip's VMEM."""
    try:
        cap = int(pltpu.get_tpu_info().vmem_capacity_bytes)
    except Exception:
        cap = 64 << 20  # conservative fallback = v7x per-TensorCore VMEM
    # v5e/v6e (128 MiB): 48 MiB of blocks; v7x (64 MiB): ~35 MiB.
    budget = min(48 << 20, int(cap * 0.55))
    vmem_limit = int(min(cap - (4 << 20), budget + (16 << 20)))
    return budget, vmem_limit


def _pick_blocks(NC, Hin, Win, Hout, Wout, x_isz, w_isz, budget):
    """Choose (channel block cb, output-row block th)."""
    awt_b = Win * Wout * w_isz * 2                      # double-buffered weights

    def fixed(th):
        ah_b = th * Hin * 4 * 2                          # double-buffered A_h block
        # in-kernel f32 intermediates live per channel: t, out slab, operand copies
        live = (Hin * Wout + th * Wout + Hin * Win) * 4
        return awt_b + ah_b + live

    def per_chan(th):
        # double-buffered input + output blocks, actual dtype sizes
        return (Hin * Win + th * Wout) * x_isz * 2

    # Start with the full output height; shrink (multiples of 8) until cb=1 fits.
    th = Hout
    while fixed(th) + per_chan(th) > budget and th > 8:
        th = max(8, ((th // 2) + 7) // 8 * 8)

    cb = int(max(1, (budget - fixed(th)) // per_chan(th)))
    cb = min(cb, NC)

    # If the whole problem fits in one grid step, split Hout so megacore (v7x)
    # has >=2 parallel steps to shard; x stays resident across Hout tiles.
    if cb >= NC and th >= Hout and Hout >= 16:
        half = (((Hout + 1) // 2) + 7) // 8 * 8
        if half < Hout:
            th = half
    return cb, th


# ----------------------------- public wrapper -----------------------------

def interpolate_pallas(x, size=None, scale_factor=None, mode='nearest',
                       align_corners=False):
    assert x.ndim == 4, "expected NCHW input"
    if mode not in ('nearest', 'bilinear', 'linear'):
        raise NotImplementedError(f"mode={mode!r} not implemented")
    N, C, Hin, Win = x.shape
    Hout, Wout = _output_size((Hin, Win), size, scale_factor)
    lin_mode = 'nearest' if mode == 'nearest' else 'linear'

    if x.dtype == jnp.float32:
        # True-f32 MXU passes: 'nearest' is an exact copy, bilinear ~f32 accurate.
        precision = lax.Precision.HIGHEST
        wdt = jnp.float32
    else:
        # Feed the MXU natively (bf16 x bf16 -> f32 acc); no in-kernel up-cast.
        precision = lax.Precision.DEFAULT
        wdt = x.dtype

    ah = jnp.asarray(_interp_matrix(Hin, Hout, lin_mode, align_corners),
                     jnp.float32)                                   # (Hout, Hin)
    awt = jnp.asarray(_interp_matrix(Win, Wout, lin_mode, align_corners).T,
                      wdt)                                          # (Win, Wout)

    NC = N * C
    xr = x.reshape(NC, Hin, Win)

    budget, vmem_limit = _vmem_budget()
    cb, th = _pick_blocks(NC, Hin, Win, Hout, Wout,
                          jnp.dtype(x.dtype).itemsize,
                          jnp.dtype(wdt).itemsize, budget)

    grid = (pl.cdiv(NC, cb), pl.cdiv(Hout, th))   # Hout axis fastest-varying

    kernel = functools.partial(_interp_kernel, precision=precision)

    out = pl.pallas_call(
        kernel,
        out_shape=jax.ShapeDtypeStruct((NC, Hout, Wout), x.dtype),
        grid=grid,
        in_specs=[
            pl.BlockSpec((cb, Hin, Win), lambda c, h: (c, 0, 0)),
            pl.BlockSpec((Win, Wout), lambda c, h: (0, 0)),
            pl.BlockSpec((th, Hin), lambda c, h: (h, 0)),
        ],
        out_specs=pl.BlockSpec((cb, th, Wout), lambda c, h: (c, h, 0)),
        compiler_params=pltpu.CompilerParams(
            dimension_semantics=("parallel", "parallel"),
            vmem_limit_bytes=vmem_limit),
    )(xr, awt, ah)
    return out.reshape(N, C, Hout, Wout)


# ----------------------------- pure-JAX reference -----------------------------

def reference_interpolate(x, size=None, scale_factor=None, mode='nearest',
                          align_corners=False):
    N, C, Hin, Win = x.shape
    Hout, Wout = _output_size((Hin, Win), size, scale_factor)
    lin_mode = 'nearest' if mode == 'nearest' else 'linear'
    hi, hw = _src_index_weights(Hin, Hout, lin_mode, align_corners)
    wi, ww = _src_index_weights(Win, Wout, lin_mode, align_corners)

    xf = x.astype(jnp.float32)
    out = jnp.zeros((N, C, Hout, Wout), jnp.float32)
    for ih, wh in zip(hi, hw):
        rows = xf[:, :, ih, :]                       # (N, C, Hout, Win) gather
        for iw, wwt in zip(wi, ww):
            vals = rows[:, :, :, iw]                 # (N, C, Hout, Wout) gather
            wgt = jnp.asarray(np.outer(wh, wwt), jnp.float32)[None, None]
            out = out + vals * wgt
    return out.astype(x.dtype)


# ----------------------------- test -----------------------------

if __name__ == "__main__":
    key = jax.random.PRNGKey(0)
    x = jax.random.normal(key, (2, 4, 16, 16), jnp.float32)

    # Tolerances are deliberately conservative; with Precision.HIGHEST honoured
    # (true-f32 MXU passes) the f32 cases are exact / ~1e-7.  The bf16 case
    # exercises the native-dtype (no up-cast) MXU path.
    cases = [
        (x, dict(scale_factor=2, mode='nearest'), 5e-3, 1e-5),
        (x, dict(scale_factor=2, mode='bilinear', align_corners=False), 2e-2, 2e-2),
        (x, dict(size=(24, 20), mode='bilinear', align_corners=True), 2e-2, 2e-2),
        (x.astype(jnp.bfloat16),
         dict(scale_factor=2, mode='bilinear', align_corners=False), 4e-2, 4e-2),
    ]
    for xin, kwargs, rtol, atol in cases:
        out = jax.block_until_ready(interpolate_pallas(xin, **kwargs))
        ref = reference_interpolate(xin, **kwargs)
        assert out.shape == ref.shape, (out.shape, ref.shape)
        np.testing.assert_allclose(np.asarray(out.astype(jnp.float32)),
                                   np.asarray(ref.astype(jnp.float32)),
                                   rtol=rtol, atol=atol)

    print("KERNEL_OK")
</pallas_src>

<mosaic_0001>
module attributes {stable_mosaic.version = 11 : i64} {
  func.func @_interp_kernel(%arg0: i32, %arg1: i32, %arg2: memref<8x16x16xf32, #tpu.memory_space<vmem>>, %arg3: memref<16x32xf32, #tpu.memory_space<vmem>>, %arg4: memref<16x16xf32, #tpu.memory_space<vmem>>, %arg5: memref<8x16x32xf32, #tpu.memory_space<vmem>>) attributes {dimension_semantics = [#tpu.dimension_semantics<parallel>, #tpu.dimension_semantics<parallel>], iteration_bounds = array<i64: 1, 2>, scalar_prefetch = 0 : i64, scratch_operands = 0 : i64, tpu.core_type = #tpu.core_type<tc>, window_params = [{transform_indices = @transform_0, window_bounds = array<i64: 8, 16, 16>}, {pipeline_mode = #tpu.pipeline_mode<synchronous>, transform_indices = @transform_1, window_bounds = array<i64: 16, 32>}, {transform_indices = @transform_2, window_bounds = array<i64: 16, 16>}, {transform_indices = @transform_3, window_bounds = array<i64: 8, 16, 32>}]} {
    %c0 = arith.constant 0 : index
    %c0_0 = arith.constant 0 : index
    %0 = vector.load %arg3[%c0, %c0_0] : memref<16x32xf32, #tpu.memory_space<vmem>>, vector<16x32xf32>
    %c0_1 = arith.constant 0 : index
    %c0_2 = arith.constant 0 : index
    %1 = vector.load %arg4[%c0_1, %c0_2] : memref<16x16xf32, #tpu.memory_space<vmem>>, vector<16x16xf32>
    %c0_i32 = arith.constant 0 : i32
    %c8_i32 = arith.constant 8 : i32
    %2 = arith.addi %c0_i32, %c8_i32 : i32
    %c1_i32 = arith.constant 1 : i32
    scf.for %arg6 = %c0_i32 to %2 step %c1_i32  : i32 {
      %c1_i32_4 = arith.constant 1 : i32
      %3 = arith.muli %arg6, %c1_i32_4 : i32
      %c0_i32_5 = arith.constant 0 : i32
      %4 = arith.addi %c0_i32_5, %3 : i32
      %5 = arith.index_cast %4 : i32 to index
      %c0_6 = arith.constant 0 : index
      %c0_7 = arith.constant 0 : index
      %6 = vector.load %arg2[%5, %c0_6, %c0_7] : memref<8x16x16xf32, #tpu.memory_space<vmem>>, vector<1x16x16xf32>
      %7 = vector.shape_cast %6 : vector<1x16x16xf32> to vector<16x16xf32>
      %cst = arith.constant dense<0.000000e+00> : vector<16x32xf32>
      %8 = tpu.matmul %7, %0, %cst {dimension_numbers = #tpu.dot_dimension_numbers<[1], [0], [0], [1], [0, 0, 1, 1], [], []>, precision = #tpu.contract_precision<fp32>} : vector<16x16xf32>, vector<16x32xf32>, vector<16x32xf32> -> vector<16x32xf32>
      %cst_8 = arith.constant dense<0.000000e+00> : vector<16x32xf32>
      %9 = tpu.matmul %1, %8, %cst_8 {dimension_numbers = #tpu.dot_dimension_numbers<[1], [0], [0], [1], [0, 0, 1, 1], [], []>, precision = #tpu.contract_precision<fp32>} : vector<16x16xf32>, vector<16x32xf32>, vector<16x32xf32> -> vector<16x32xf32>
      %10 = arith.index_cast %4 : i32 to index
      %c0_9 = arith.constant 0 : index
      %c0_10 = arith.constant 0 : index
      %11 = vector.load %arg5[%10, %c0_9, %c0_10] : memref<8x16x32xf32, #tpu.memory_space<vmem>>, vector<1x16x32xf32>
      %12 = vector.shape_cast %11 : vector<1x16x32xf32> to vector<16x32xf32>
      %13 = vector.shape_cast %9 : vector<16x32xf32> to vector<1x16x32xf32>
      tpu.vector_store %arg5[%10, %c0_9, %c0_10], %13 {strides = array<i32>} : memref<8x16x32xf32, #tpu.memory_space<vmem>>, vector<1x16x32xf32>,
    }
    %c8_i32_3 = arith.constant 8 : i32
    return
  }
  func.func @transform_0(%arg0: i32, %arg1: i32) -> (i32, i32, i32) {
    %c0_i32 = arith.constant 0 : i32
    %c0_i32_0 = arith.constant 0 : i32
    %c0_i32_1 = arith.constant 0 : i32
    return %arg0, %c0_i32, %c0_i32_0 : i32, i32, i32
  }
  func.func @transform_1(%arg0: i32, %arg1: i32) -> (i32, i32) {
    %c0_i32 = arith.constant 0 : i32
    %c0_i32_0 = arith.constant 0 : i32
    %c0_i32_1 = arith.constant 0 : i32
    return %c0_i32, %c0_i32_0 : i32, i32
  }
  func.func @transform_2(%arg0: i32, %arg1: i32) -> (i32, i32) {
    %c0_i32 = arith.constant 0 : i32
    %c0_i32_0 = arith.constant 0 : i32
    return %arg1, %c0_i32 : i32, i32
  }
  func.func @transform_3(%arg0: i32, %arg1: i32) -> (i32, i32, i32) {
    %c0_i32 = arith.constant 0 : i32
    %c0_i32_0 = arith.constant 0 : i32
    return %arg0, %arg1, %c0_i32 : i32, i32, i32
  }
}

</mosaic_0001>

<bundles_post_ra>
// kernel: tpu_custom_call.1
= control target key start
LH: loop header
LB: loop body
LE: loop exit
PB: predicated region body
PF: predicated region fallthrough
CT: control target
= control target key end

     0   :  { %8 = vsyncpa [#allocation3], 0  ;;  %s2003_s0 = inlined_call_operand.hbm [shape: f32[8,16,16], index: 0, kind: input, shape index: {}]   ;;  %s2004_s1 = inlined_call_operand.vmem [shape: f32[16,32], index: 1, kind: input, shape index: {}]   ;;  %s2005_s2 = inlined_call_operand.vmem [shape: f32[32,16], index: 2, kind: input, shape index: {}]   ;;  %s2006_s3 = inlined_call_operand.hbm [shape: f32[8,32,32], index: 3, kind: output, shape index: {}]  }
   0x1   :  { %9 = vsyncpa [#allocation4], 0 }
   0x2   :  { %11 = vsyncpa [#allocation4 + $0x1], 0  ;;  %s1817_s12 = smov 0   ;;  %s1819_s13 = smov 0  }
   0x3   :  { %s1821_s14 = smov 0   ;;  %s1823_s15 = smov 0  }
   0x4   :  { %s1825_s16 = smov 0   ;;  %s1827_s17 = smov 0  }
   0x5 LB: > { %s1389_s18 = sadd.s32 4294967295, %s1781_s17   ;;  %s1390_s19 = sadd.s32 4294967294, %s1781_s17   ;;  %s1781_s17 = sphi %s1827_s17, %s17_s17   ;;  %s1777_s16 = sphi %s1825_s16, %s2024_s16   ;;  %s1773_s15 = sphi %s1823_s15, %s2023_s15   ;;  %s1769_s14 = sphi %s1821_s14, %s2022_s14   ;;  %s1765_s13 = sphi %s1819_s13, %s2021_s13   ;;  %s1761_s12 = sphi %s1817_s12, %s2020_s12  }
   0x6   : > { %s26_s20 = sadd.s32 1, %s1777_s16  ;;  %s111_s21 = sadd.s32 1, %s1769_s14 }
   0x7   : > { %p27_p0 = scmp.ge.s32.totalorder %s26_s20, 2  ;;  %p121_p1 = scmp.ne.s32.totalorder %s1769_s14, %s1765_s13 }
   0x8   : > { %p122_p2 = scmp.eq.s32.totalorder %s1389_s18, 1  ;;  %p127_p3 = scmp.ne.s32.totalorder %s1765_s13, %s1761_s12 }
   0x9   : > { %s2026_s20 = smov (%p27_p0, %s26_s20), 0  ;;  %p128_p5 = scmp.eq.s32.totalorder %s1390_s19, 1 }
   0xa   : > { %p1857_p4 = por %p122_p2, %p121_p1  ;;  %s107_s23 = ssub.s32 %s1777_s16, %s2026_s20 }
   0xb   : > { %p1391_p6 = scmp.ge.s32.totalorder %s1781_s17, 1  ;;  %p109_p7 = scmp.eq.s32.totalorder %s107_s23, 0 }
   0xc   : > { %s2011_s22 = scalar_select %p1857_p4, 1, 0 }
   0xd   : > { %p1864_p8 = por %p128_p5, %p127_p3  ;;  %p135_p9 = scmp.lt.s32.totalorder %s1781_s17, 3 }
   0xe   : > { %s1870_s25 = scalar_select %p109_p7, %s1769_s14, %s111_s21  }
   0xf   : > { %s2012_s24 = scalar_select %p1864_p8, 1, 0 }
  0x10   : > { %p1872_p10 = pnand %p1391_p6, %p135_p9  ;;  %p1876_p11 = scmp.eq.s32.totalorder %s1389_s18, 0 }
  0x11   : > { %s1787_s28 = smov [#allocation2]   ;;  %s1695_s6 = scalar_lea.hbm %s2003_s0, 2048 }
  0x12   : > { %s2013_s26 = scalar_select %p1872_p10, 1, 0 }
  0x13   : > { %s2014_s27 = scalar_select %p1876_p11, 1, 0 }
  0x14   : > { %p1618_p12 = pneg %p1872_p10  ;;  %s151_s29 = sshll.u32 %s1787_s28, 4  ;;  %s152_s29 = int_to_ptr.vmem [resolvable:$true] %s151_s29 }
  0x15   : > { %p1696_p0 = scmp.ne.s32.totalorder %s2003_s0, %s1695_s6  ;;  %p1702_p5 = scmp.lt.u32.totalorder %s1695_s6, %s2003_s0 }
  0x16   : > { %p1884_p13 = pnand %p1876_p11, %p1618_p12 }
  0x18   : > { %p1697_p1 = pneg %p1884_p13 }
  0x1a   : > { %p1698_p2 = pnand %p1697_p1, %p1696_p0 }
  0x1c   : > { %p1699_p3 = pneg %p1698_p2 }
  0x1e   : > { %p1704_p6 = pnand %p1702_p5, %p1699_p3 }
  0x20   : > { %1707 = shalt.err (!%p1704_p6)
}
  0x21   : > { %s1708_s11 = scalar_lea.vmem %s152_s29, 2048  ;;  %p1716_p8 = scmp.lt.s32.totalorder %s152_s29, %s152_s29 }
  0x22   : > { %p1709_p7 = scmp.ne.s32.totalorder %s152_s29, %s1708_s11  ;;  %p1717_p4 = scmp.lt.s32.totalorder %s1708_s11, %s1708_s11 }
  0x24   : > { %p1711_p9 = pnand %p1709_p7, %p1697_p1  ;;  %p1718_p11 = por %p1717_p4, %p1716_p8 }
  0x26   : > { %p1712_p12 = pneg %p1711_p9 }
  0x28   : > { %p1719_p10 = pnand %p1718_p11, %p1712_p12 }
  0x2a   : > { %1722 = shalt.err (!%p1719_p10)
}
  0x2b   : > { %s1788_s18 = smov 128   ;;  %s1789_s19 = smov 8  }
  0x2c   : > { %1621 = dma.hbm_to_vmem [thread:$0]  (!%p1884_p13), %s2003_s0, 2048, %s152_s29, [#allocation3], %s1788_s18, %s1788_s18, %s1789_s19  }
  0x2d   : > { %p2016_p0 = scmp.ne.s32.totalorder %s2013_s26, 0 }
  0x2e   : > { %p2017_p2 = scmp.ne.s32.totalorder (!%p2016_p0), %s2014_s27, 0 }
  0x2f   : > { %179 = sbr.rel (%p2016_p0) target bundleno = 603 (0x25b), region = 32 }
  0x36   : > { %1752 = dma.done.wait (%p2017_p2), [#allocation3], 2048  }
  0x37   : > { %1754 = vsyncadd (%p2017_p2), [#allocation3], 4294965248  ;;  %s1397_s28 = sshll.u32 %s1773_s15, 1  ;;  %s200_s4 = sand.u32 1, %s1765_s13   ;;  %v1922_v0 = vld [vmem:[%s2004_s1] sm:$0xff]  ;;  %v1927_v1 = vld [vmem:[%s2004_s1 + $0x8] sm:$0xff] }
  0x38   : > { %p205_p4 = scmp.lt.s32.totalorder %s1397_s28, 3  ;;  %s1914_s30 = sshll.u32 %s200_s4, 7 }
  0x39   : > { %s202_s10 = scalar_lea.vmem [#allocation5], %s1914_s30  ;;  %s1934_s11 = smov 0  }
  0x3a   : > { %s2028_s28 = smov (!%p205_p4, %s1397_s28), 3 }
  0x3b   : > { %s1398_s29 = sshll.u32 %s2028_s28, 3 }
  0x3c   : > { %s208_s6 = scalar_lea.vmem %s2005_s2, %s1398_s29 }
  0x3d   : > { %v1929_v2 = vld [vmem:[%s208_s6] sm:$0xff]  ;;  %v1931_v3 = vld [vmem:[%s208_s6 + $0x8] sm:$0xff] }
  0x3e LB: >> { %v234_v4 = vand.u32 4294901760, %v1922_v0  ;;  %v237_v5 = vand.u32 4294901760, %v1927_v1  ;;  %s1399_s18 = sshll.u32 %s1785_s11, 4  ;;  %vm226_vm0 = vcmask 130048   ;;  %vm1244_vm1 = vcmask 261120   ;;  %s221_s11 = sadd.s32 1, %s1785_s11   ;;  %s1785_s11 = sphi %s1934_s11, %s221_s11  }
  0x3f   : >> { %s223_s19 = scalar_lea.vmem [#allocation2], %s1399_s18  ;;  %v736_v32 = vsel %vm226_vm0, %v1929_v2, 0  ;;  %v739_v38 = vsel %vm226_vm0, %v1931_v3, 0  ;;  %s1243_s21 = scalar_lea.vmem %s202_s10, %s1399_s18 [#allocation5] }
  0x40   : >> { %v1538_v6 = vpack.c.bf16 %v237_v5, %v234_v4  ;;  %v322_v7 = vsub.f32 %v1922_v0, %v234_v4  ;;  %v329_v8 = vsub.f32 %v1927_v1, %v237_v5  ;;  %v224_v9 = vld [vmem:[%s223_s19] sm:$0xff]  ;;  %v225_v10 = vld [vmem:[%s223_s19 + $0x8] sm:$0xff]  ;;  %v808_v33 = vand.u32 4294901760, %v736_v32  ;;  %p218_p8 = scmp.ge.s32.totalorder %s221_s11, 8  }
  0x41   : >> { %v228_v13 = vsel %vm226_vm0, %v224_v9, 0  ;;  %v231_v14 = vsel %vm226_vm0, %v225_v10, 0  ;;  %v818_v39 = vand.u32 4294901760, %v739_v38  ;;  %s1248_s23 = scalar_lea.sflag (%p218_p8), [#allocation4], %s200_s4 }
  0x42   : >> { %1539 = vmatprep.subr.bf16.mxu0 %v1538_v6  ;;  %v323_v11 = vand.u32 4294901760, %v322_v7  ;;  %v330_v12 = vand.u32 4294901760, %v329_v8  ;;  %v300_v15 = vand.u32 4294901760, %v228_v13  ;;  %v310_v16 = vand.u32 4294901760, %v231_v14 }
  0x43   : >> { %1541 = vmatpush3.bf16.msra.mxu0 %v1538_v6  ;;  %v1546_v30 = vpack.c.bf16 %v329_v8, %v322_v7  ;;  %v809_v34 = vsub.f32 %v736_v32, %v808_v33  ;;  %v819_v40 = vsub.f32 %v739_v38, %v818_v39 }
  0x44   : >> { %v324_v17 = vsub.f32 %v322_v7, %v323_v11  ;;  %v331_v18 = vsub.f32 %v329_v8, %v330_v12  ;;  %v301_v19 = vsub.f32 %v228_v13, %v300_v15  ;;  %v311_v20 = vsub.f32 %v231_v14, %v310_v16 }
  0x45   : >> { %v1554_v31 = vpack.c.bf16 %v330_v12, %v323_v11  ;;  %v810_v35 = vand.u32 4294901760, %v809_v34  ;;  %v820_v41 = vand.u32 4294901760, %v819_v40 }
  0x46   : >> { %v325_v21 = vand.u32 4294901760, %v324_v17  ;;  %v332_v22 = vand.u32 4294901760, %v331_v18  ;;  %v302_v23 = vand.u32 4294901760, %v301_v19  ;;  %v312_v24 = vand.u32 4294901760, %v311_v20 }
  0x47   : >> { %v811_v36 = vsub.f32 %v809_v34, %v810_v35  ;;  %v821_v46 = vsub.f32 %v819_v40, %v820_v41 }
  0x48   : >> { %v1542_v25 = vpack.c.bf16 %v332_v22, %v325_v21  ;;  %v303_v26 = vsub.f32 %v301_v19, %v302_v23  ;;  %v313_v27 = vsub.f32 %v311_v20, %v312_v24 }
  0x49   : >> { %v812_v37 = vand.u32 4294901760, %v811_v36  ;;  %v822_v52 = vand.u32 4294901760, %v821_v46 }
  0x4a   : >> { %1543 = vmatprep.subr.bf16.mxu0 %v1542_v25  ;;  %v304_v28 = vand.u32 4294901760, %v303_v26  ;;  %v314_v29 = vand.u32 4294901760, %v313_v27 }
  0x4b   : >> { %1500 = vmatprep.mubr.f32.mxu1 %v812_v37 }
  0x4c   : >> { %1458 = vmatprep.mubr.f32.mxu0 %v304_v28 }
  0x4d   : >> { %1459 = vmatmul.mubr.f32.vlgmr.msra.gmra.mrb[0].mxu0 %v314_v29 }
  0x4e   : >> { %1545 = vmatpush3.bf16.msra.mxu0 %v1542_v25  ;;  %1465 = vmatprep.mubr.f32.mxu0 %v300_v15 }
  0x4f   : >> { %1547 = vmatprep.subr.bf16.mxu0 %v1546_v30 }
  0x55   : >> { %1466 = vmatmul.mubr.f32.vlgmr.msra.gmra.mrb[0].mxu0 %v310_v16 }
  0x56   : >> { %1549 = vmatpush3.bf16.msra.mxu0 %v1546_v30  ;;  %1472 = vmatprep.mubr.f32.mxu0 %v301_v19 }
  0x57   : >> { %1551 = vmatprep.subr.bf16.mxu0 %v1538_v6 }
  0x5d   : >> { %1473 = vmatmul.mubr.f32.vlgmr.msra.gmra.mrb[0].mxu0 %v311_v20 }
  0x5e   : >> { %1553 = vmatpush3.bf16.msra.mxu0 %v1538_v6  ;;  %1479 = vmatprep.mubr.f32.mxu0 %v302_v23 }
  0x5f   : >> { %1555 = vmatprep.subr.bf16.mxu0 %v1554_v31 }
  0x65   : >> { %1480 = vmatmul.mubr.f32.vlgmr.msra.gmra.mrb[0].mxu0 %v312_v24 }
  0x66   : >> { %1557 = vmatpush3.bf16.msra.mxu0 %v1554_v31  ;;  %1486 = vmatprep.mubr.f32.mxu0 %v300_v15 }
  0x67   : >> { %1559 = vmatprep.subr.bf16.mxu0 %v1538_v6 }
  0x6d   : >> { %1487 = vmatmul.mubr.f32.vlgmr.msra.gmra.mrb[0].mxu0 %v310_v16 }
  0x6e   : >> { %1561 = vmatpush3.bf16.msra.mxu0 %v1538_v6  ;;  %1493 = vmatprep.mubr.f32.mxu0 %v300_v15 }
  0x75   : >> { %1494 = vmatmul.mubr.f32.vlgmr.msra.gmra.mrb[0].mxu0 %v310_v16 }
 0x148   : >> { %v1495_v42 = vpop.f32.mrb[0].mxu0 }
 0x149   : >> { %v745_v43 = vand.u32 4294901760, %v1495_v42  ;;  %v725_v44 = vpop.f32.mrb[1].mxu0 }
 0x14a   : >> { %v742_v45 = vand.u32 4294901760, %v725_v44 }
 0x14b   : >> { %v837_v47 = vsub.f32 %v1495_v42, %v745_v43 }
 0x14c   : >> { %v1562_v48 = vpack.c.bf16 %v745_v43, %v742_v45  ;;  %v830_v49 = vsub.f32 %v725_v44, %v742_v45 }
 0x14d   : >> { %v838_v50 = vand.u32 4294901760, %v837_v47 }
 0x14e   : >> { %v831_v51 = vand.u32 4294901760, %v830_v49  ;;  %1563 = vmatprep.subr.bf16.mxu1 %v1562_v48  ;;  %v1570_v53 = vpack.c.bf16 %v837_v47, %v830_v49 }
 0x14f   : >> { %v839_v54 = vsub.f32 %v837_v47, %v838_v50  ;;  %1565 = vmatpush3.bf16.msra.mxu1 %v1562_v48 }
 0x150   : >> { %v832_v55 = vsub.f32 %v830_v49, %v831_v51  ;;  %v1578_v56 = vpack.c.bf16 %v838_v50, %v831_v51 }
 0x151   : >> { %v840_v57 = vand.u32 4294901760, %v839_v54 }
 0x152   : >> { %v833_v58 = vand.u32 4294901760, %v832_v55  ;;  %1501 = vmatmul.mubr.f32.vlgmr.msra.gmra.mrb[0].mxu1 %v822_v52 }
 0x153   : >> { %1507 = vmatprep.mubr.f32.mxu1 %v808_v33 }
 0x154   : >> { %v1566_v59 = vpack.c.bf16 %v840_v57, %v833_v58 }
 0x156   : >> { %1567 = vmatprep.subr.bf16.mxu1 %v1566_v59 }
 0x157   : >> { %1569 = vmatpush3.bf16.msra.mxu1 %v1566_v59 }
 0x158   : >> { %1571 = vmatprep.subr.bf16.mxu1 %v1570_v53 }
 0x15a   : >> { %1508 = vmatmul.mubr.f32.vlgmr.msra.gmra.mrb[0].mxu1 %v818_v39 }
 0x15b   : >> { %1573 = vmatpush3.bf16.msra.mxu1 %v1570_v53  ;;  %1514 = vmatprep.mubr.f32.mxu1 %v809_v34 }
 0x15c   : >> { %1575 = vmatprep.subr.bf16.mxu1 %v1562_v48 }
 0x162   : >> { %1515 = vmatmul.mubr.f32.vlgmr.msra.gmra.mrb[0].mxu1 %v819_v40 }
 0x163   : >> { %1577 = vmatpush3.bf16.msra.mxu1 %v1562_v48  ;;  %1521 = vmatprep.mubr.f32.mxu1 %v810_v35 }
 0x164   : >> { %1579 = vmatprep.subr.bf16.mxu1 %v1578_v56 }
 0x16a   : >> { %1522 = vmatmul.mubr.f32.vlgmr.msra.gmra.mrb[0].mxu1 %v820_v41 }
 0x16b   : >> { %1581 = vmatpush3.bf16.msra.mxu1 %v1578_v56  ;;  %1528 = vmatprep.mubr.f32.mxu1 %v808_v33 }
 0x16c   : >> { %1583 = vmatprep.subr.bf16.mxu1 %v1562_v48 }
 0x172   : >> { %1529 = vmatmul.mubr.f32.vlgmr.msra.gmra.mrb[0].mxu1 %v818_v39 }
 0x173   : >> { %1585 = vmatpush3.bf16.msra.mxu1 %v1562_v48  ;;  %1535 = vmatprep.mubr.f32.mxu1 %v808_v33 }
 0x17a   : >> { %1536 = vmatmul.mubr.f32.vlgmr.msra.gmra.mrb[0].mxu1 %v818_v39 }
 0x249   : > { %220 = sbr.rel (!%p218_p8) target bundleno = 62 (0x3e), region = 87 }
 0x24d   : >> { %v1537_v60 = vpop.f32.mrb[0].mxu1 }
 0x24e   : >> { %1246 = vst.msk [vmem:[%s1243_s21 + $0x8] sm:$0xff] %vm1244_vm1, %v1537_v60  ;;  %v1233_v61 = vpop.f32.mrb[1].mxu1 }
 0x24f   : >> { %1245 = vst.msk [vmem:[%s1243_s21] sm:$0xff] %vm1244_vm1, %v1233_v61 }
 0x250   : > { %s1405_s28 = sshll.u32 %s1773_s15, 8  ;;  %s1280_s29 = sshll.u32 %s202_s10, 4  ;;  %s1281_s29 = int_to_ptr.vmem [resolvable:$true] %s1280_s29 }
 0x251   : > { %s1263_s6 = scalar_lea.hbm %s2006_s3, %s1405_s28  ;;  %s1790_s7 = smov 256  }
 0x252   : > { %p2018_p10 = scmp.ne.s32.totalorder %s2011_s22, 0  ;;  %s1791_s4 = smov 512  }
 0x253   : > { %s1792_s8 = smov 2   ;;  %s1793_s27 = smov 128  }
 0x254   : > { %1610 = sst [smem:[#allocation7]] (%p2018_p10), %s1790_s7  ;;  %s1794_s15 = smov 8  }
 0x255   : > { %1611 = sst [smem:[#allocation7 + $0x1]] (%p2018_p10), %s1791_s4  ;;  %s1795_s30 = smov [#allocation6]  }
 0x256   : > { %1612 = sst [smem:[#allocation7 + $0x2]] (%p2018_p10), %s1792_s8  ;;  %s1796_s9 = smov 0  }
 0x257   : > { %1613 = sst [smem:[#allocation7 + $0x3]] (%p2018_p10), %s1793_s27 }
 0x258   : > { %1614 = sst [smem:[#allocation7 + $0x4]] (%p2018_p10), %s1793_s27 }
 0x259   : > { %1615 = sst [smem:[#allocation7 + $0x5]] (%p2018_p10), %s1794_s15 }
 0x25a   : > { %1616 = dma.general (%p2018_p10), %s1281_s29, 2048, %s1263_s6, %s1248_s23, %s1795_s30, [#allocation7], %s1796_s9, 0  }
 0x25b PF: > { %p1628_p11 = scmp.ge.s32.totalorder %s1781_s17, 2  ;;  %s1308_s10 = sand.u32 1, %s1761_s12  }
 0x25c   : > { %p2019_p13 = scmp.ne.s32.totalorder %s2012_s24, 0  ;;  %s1309_s11 = scalar_lea.sflag [#allocation4], %s1308_s10 }
 0x25e   : > { %p1623_p1 = pnand %p1628_p11, %p2019_p13 }
 0x260   : > { %1756 = dma.done.wait (!%p1623_p1), %s1309_s11, 2048  }
 0x261   : > { %1758 = vsyncadd (!%p1623_p1), %s1309_s11, 4294965248  ;;  %s17_s17 = sadd.s32 1, %s1781_s17   ;;  %s2020_s12 = smov %s1765_s13 }
 0x262   : > { %p14_p3 = scmp.ge.s32.totalorder %s17_s17, 4   ;;  %s2021_s13 = smov %s1769_s14 }
 0x263   : > { %s2022_s14 = smov %s1870_s25  ;;  %s2023_s15 = smov %s1777_s16 }
 0x264   : > { %s2024_s16 = smov %s2026_s20  ;;  %16 = sbr.rel (!%p14_p3) target bundleno = 5 (0x5), region = 98 }
 0x26b   :  { %1314 = vsyncpa [#allocation3], 1 }
 0x26c   :  { %1316 = vsyncpa [#allocation3 + $0x1], 1 }
 0x26d   :  { %1317 = vsyncpa [#allocation4], 1 }
 0x26e   :  { %1319 = vsyncpa [#allocation4 + $0x1], 1 }

</bundles_post_ra>
